<compile_context>
chip_gen: v7x
topology: tpu7x:2x2x1
jax: 0.10.0
libtpu: 0.0.40
codegen_flags: <defaults>
</compile_context>

<pallas_src>
import jax
import jax.numpy as jnp
from jax.experimental import pallas as pl
from jax.experimental.pallas import tpu as pltpu


class Config:
    emb_dim = 32
    ff_dim = 64
    p_drop = 0.0          # dropout is identity in this forward pass
    weight_mean = 0.0
    weight_std = 0.02
    activation = "gelu"   # nn.GELU (exact erf form, PyTorch default)


def _erf(x):
    """Elementwise erf via Abramowitz & Stegun 7.1.26 (|err| <= 1.5e-7).

    Built from exp / reciprocal / mul / add / abs / select so it lowers
    cleanly in Mosaic; the reciprocal and exp land on the otherwise-idle EUP.
    """
    a1, a2, a3, a4, a5 = (0.254829592, -0.284496736, 1.421413741,
                          -1.453152027, 1.061405429)
    p = 0.3275911
    s = jnp.where(x < 0.0, -1.0, 1.0)
    z = jnp.abs(x)
    t = pl.reciprocal(1.0 + p * z, approx=True)          # EUP, not VALU divide
    poly = ((((a5 * t + a4) * t + a3) * t + a2) * t + a1) * t
    return s * (1.0 - poly * jnp.exp(-z * z))


def _gelu_exact(x):
    # PyTorch nn.GELU default: 0.5 * x * (1 + erf(x / sqrt(2)))
    return 0.5 * x * (1.0 + _erf(x * 0.7071067811865476))


def feed_forward_kernel(x_ref, w1_ref, b1_ref, w2_ref, b2_ref, out_ref):
    # x tile: (TILE_N, D) bf16; W1/W2 bf16 (VMEM-resident); biases f32.
    h = jnp.dot(x_ref[...], w1_ref[...],
                preferred_element_type=jnp.float32) + b1_ref[...]   # (TILE_N, F) f32
    h = _gelu_exact(h)                                              # GELU in f32
    y = jnp.dot(h.astype(w2_ref.dtype), w2_ref[...],
                preferred_element_type=jnp.float32) + b2_ref[...]   # (TILE_N, D) f32
    out_ref[...] = y.astype(out_ref.dtype)   # output_dropout(p_drop=0) == identity


def _round_up(a, b):
    return (a + b - 1) // b * b


def feed_forward(x, w1, b1, w2, b2, *, tile_n=512):
    """x: (..., D); w1: (D, F); b1: (F,); w2: (F, D); b2: (D,).

    Weights are pre-transposed to (in, out) so the kernel computes y = x @ W + b
    directly on the MXU. The flattened row/token axis is tiled with a 1-D grid;
    weights and biases are DMA'd once and stay resident in VMEM.
    """
    orig_shape = x.shape
    orig_dtype = x.dtype
    D, F = w1.shape

    x2 = x.reshape(-1, D)
    n = x2.shape[0]

    # Row tile: multiple of 8 (sublane), capped at tile_n; pad rows to a
    # multiple of the tile (padded rows are computed then sliced away).
    tn = min(tile_n, _round_up(max(n, 1), 8))
    n_pad = _round_up(n, tn)
    if n_pad != n:
        x2 = jnp.pad(x2, ((0, n_pad - n), (0, 0)))

    # bf16 in HBM for the bandwidth-heavy operands; f32 accumulation in-kernel.
    x_b = x2.astype(jnp.bfloat16)
    w1_b = w1.astype(jnp.bfloat16)
    w2_b = w2.astype(jnp.bfloat16)
    b1_2d = b1.reshape(1, F).astype(jnp.float32)
    b2_2d = b2.reshape(1, D).astype(jnp.float32)

    grid = (n_pad // tn,)
    cost = pl.CostEstimate(
        flops=4 * n_pad * D * F,                                   # two matmuls
        transcendentals=2 * n_pad * F,                             # exp + rcp per h elem
        bytes_accessed=2 * (2 * n_pad * D + 2 * D * F) + 4 * (D + F),
    )

    out = pl.pallas_call(
        feed_forward_kernel,
        out_shape=jax.ShapeDtypeStruct((n_pad, D), jnp.bfloat16),
        grid=grid,
        in_specs=[
            pl.BlockSpec((tn, D), lambda i: (i, 0)),     # x: streamed row tiles
            pl.BlockSpec((D, F), lambda i: (0, 0)),      # W1: resident
            pl.BlockSpec((1, F), lambda i: (0, 0)),      # b1: resident
            pl.BlockSpec((F, D), lambda i: (0, 0)),      # W2: resident
            pl.BlockSpec((1, D), lambda i: (0, 0)),      # b2: resident
        ],
        out_specs=pl.BlockSpec((tn, D), lambda i: (i, 0)),
        compiler_params=pltpu.CompilerParams(
            dimension_semantics=("parallel",)),          # megacore on v7x
        cost_estimate=cost,
    )(x_b, w1_b, b1_2d, w2_b, b2_2d)

    return out[:n].astype(orig_dtype).reshape(orig_shape)


if __name__ == "__main__":
    cfg = Config()
    B, T, D, F = 2, 8, cfg.emb_dim, cfg.ff_dim

    key = jax.random.PRNGKey(0)
    kx, kw1, kb1, kw2, kb2 = jax.random.split(key, 5)

    def normal(k, shape):
        return (cfg.weight_mean
                + cfg.weight_std * jax.random.normal(k, shape, jnp.float32))

    x = jax.random.normal(kx, (B, T, D), jnp.float32)
    # PyTorch nn.Linear stores weight as (out, in); pre-transpose to (in, out).
    w1 = normal(kw1, (F, D)).T            # (D, F)
    b1 = normal(kb1, (F,))
    w2 = normal(kw2, (D, F)).T            # (F, D)
    b2 = normal(kb2, (D,))

    y = feed_forward(x, w1, b1, w2, b2)
    jax.block_until_ready(y)
    assert y.shape == (B, T, D)
    assert y.dtype == x.dtype

    # Pure-JAX f32 reference (exact-erf GELU, matching nn.GELU default).
    h_ref = jnp.einsum('btd,df->btf', x, w1) + b1
    h_ref = jax.nn.gelu(h_ref, approximate=False)
    y_ref = jnp.einsum('btf,fd->btd', h_ref, w2) + b2
    max_err = float(jnp.max(jnp.abs(y - y_ref)))
    # bf16 HBM traffic + f32 accumulation -> expect ~1e-4 level error.
    assert jnp.allclose(y, y_ref, atol=2e-3, rtol=2e-2), max_err

    print("KERNEL_OK")
</pallas_src>

<mosaic_0001>
module attributes {stable_mosaic.version = 11 : i64} {
  func.func @feed_forward_kernel(%arg0: i32, %arg1: memref<16x32xbf16, #tpu.memory_space<vmem>>, %arg2: memref<32x64xbf16, #tpu.memory_space<vmem>>, %arg3: memref<1x64xf32, #tpu.memory_space<vmem>>, %arg4: memref<64x32xbf16, #tpu.memory_space<vmem>>, %arg5: memref<1x32xf32, #tpu.memory_space<vmem>>, %arg6: memref<16x32xbf16, #tpu.memory_space<vmem>>) attributes {dimension_semantics = [#tpu.dimension_semantics<parallel>], iteration_bounds = array<i64: 1>, scalar_prefetch = 0 : i64, scratch_operands = 0 : i64, tpu.core_type = #tpu.core_type<tc>, window_params = [{transform_indices = @transform_0, window_bounds = array<i64: 16, 32>}, {pipeline_mode = #tpu.pipeline_mode<synchronous>, transform_indices = @transform_1, window_bounds = array<i64: 32, 64>}, {pipeline_mode = #tpu.pipeline_mode<synchronous>, transform_indices = @transform_2, window_bounds = array<i64: 1, 64>}, {pipeline_mode = #tpu.pipeline_mode<synchronous>, transform_indices = @transform_3, window_bounds = array<i64: 64, 32>}, {pipeline_mode = #tpu.pipeline_mode<synchronous>, transform_indices = @transform_4, window_bounds = array<i64: 1, 32>}, {transform_indices = @transform_5, window_bounds = array<i64: 16, 32>}]} {
    %c0 = arith.constant 0 : index
    %c0_0 = arith.constant 0 : index
    %0 = vector.load %arg1[%c0, %c0_0] : memref<16x32xbf16, #tpu.memory_space<vmem>>, vector<16x32xbf16>
    %c0_1 = arith.constant 0 : index
    %c0_2 = arith.constant 0 : index
    %1 = vector.load %arg2[%c0_1, %c0_2] : memref<32x64xbf16, #tpu.memory_space<vmem>>, vector<32x64xbf16>
    %cst = arith.constant dense<0.000000e+00> : vector<16x64xf32>
    %2 = tpu.matmul %0, %1, %cst {dimension_numbers = #tpu.dot_dimension_numbers<[1], [0], [0], [1], [0, 0, 1, 1], [], []>} : vector<16x32xbf16>, vector<32x64xbf16>, vector<16x64xf32> -> vector<16x64xf32>
    %c0_3 = arith.constant 0 : index
    %c0_4 = arith.constant 0 : index
    %3 = vector.load %arg3[%c0_3, %c0_4] : memref<1x64xf32, #tpu.memory_space<vmem>>, vector<1x64xf32>
    %4 = vector.broadcast %3 : vector<1x64xf32> to vector<16x64xf32>
    %5 = arith.addf %2, %4 : vector<16x64xf32>
    %cst_5 = arith.constant 5.000000e-01 : f32
    %6 = vector.broadcast %cst_5 : f32 to vector<16x64xf32>
    %7 = arith.mulf %6, %5 : vector<16x64xf32>
    %cst_6 = arith.constant 0.707106769 : f32
    %8 = vector.broadcast %cst_6 : f32 to vector<16x64xf32>
    %9 = arith.mulf %5, %8 : vector<16x64xf32>
    %cst_7 = arith.constant 0.000000e+00 : f32
    %10 = vector.broadcast %cst_7 : f32 to vector<16x64xf32>
    %11 = arith.cmpf olt, %9, %10 : vector<16x64xf32>
    %cst_8 = arith.constant -1.000000e+00 : f32
    %cst_9 = arith.constant 1.000000e+00 : f32
    %12 = vector.broadcast %cst_8 : f32 to vector<16x64xf32>
    %13 = vector.broadcast %cst_9 : f32 to vector<16x64xf32>
    %14 = arith.select %11, %12, %13 : vector<16x64xi1>, vector<16x64xf32>
    %15 = math.absf %9 : vector<16x64xf32>
    %cst_10 = arith.constant 0.327591091 : f32
    %16 = vector.broadcast %cst_10 : f32 to vector<16x64xf32>
    %17 = arith.mulf %16, %15 : vector<16x64xf32>
    %cst_11 = arith.constant 1.000000e+00 : f32
    %18 = vector.broadcast %cst_11 : f32 to vector<16x64xf32>
    %19 = arith.addf %18, %17 : vector<16x64xf32>
    %20 = tpu.reciprocal %19 {approx = true} : vector<16x64xf32> -> vector<16x64xf32>
    %cst_12 = arith.constant 1.06140542 : f32
    %21 = vector.broadcast %cst_12 : f32 to vector<16x64xf32>
    %22 = arith.mulf %21, %20 : vector<16x64xf32>
    %cst_13 = arith.constant -1.45315206 : f32
    %23 = vector.broadcast %cst_13 : f32 to vector<16x64xf32>
    %24 = arith.addf %22, %23 : vector<16x64xf32>
    %25 = arith.mulf %24, %20 : vector<16x64xf32>
    %cst_14 = arith.constant 1.42141378 : f32
    %26 = vector.broadcast %cst_14 : f32 to vector<16x64xf32>
    %27 = arith.addf %25, %26 : vector<16x64xf32>
    %28 = arith.mulf %27, %20 : vector<16x64xf32>
    %cst_15 = arith.constant -0.284496725 : f32
    %29 = vector.broadcast %cst_15 : f32 to vector<16x64xf32>
    %30 = arith.addf %28, %29 : vector<16x64xf32>
    %31 = arith.mulf %30, %20 : vector<16x64xf32>
    %cst_16 = arith.constant 0.254829586 : f32
    %32 = vector.broadcast %cst_16 : f32 to vector<16x64xf32>
    %33 = arith.addf %31, %32 : vector<16x64xf32>
    %34 = arith.mulf %33, %20 : vector<16x64xf32>
    %cst_17 = arith.constant 0.000000e+00 : f32
    %35 = vector.broadcast %cst_17 : f32 to vector<16x64xf32>
    %36 = arith.subf %35, %15 : vector<16x64xf32>
    %37 = arith.mulf %36, %15 : vector<16x64xf32>
    %38 = math.exp %37 : vector<16x64xf32>
    %39 = arith.mulf %34, %38 : vector<16x64xf32>
    %cst_18 = arith.constant 1.000000e+00 : f32
    %40 = vector.broadcast %cst_18 : f32 to vector<16x64xf32>
    %41 = arith.subf %40, %39 : vector<16x64xf32>
    %42 = arith.mulf %14, %41 : vector<16x64xf32>
    %cst_19 = arith.constant 1.000000e+00 : f32
    %43 = vector.broadcast %cst_19 : f32 to vector<16x64xf32>
    %44 = arith.addf %43, %42 : vector<16x64xf32>
    %45 = arith.mulf %7, %44 : vector<16x64xf32>
    %46 = arith.truncf %45 : vector<16x64xf32> to vector<16x64xbf16>
    %c0_20 = arith.constant 0 : index
    %c0_21 = arith.constant 0 : index
    %47 = vector.load %arg4[%c0_20, %c0_21] : memref<64x32xbf16, #tpu.memory_space<vmem>>, vector<64x32xbf16>
    %cst_22 = arith.constant dense<0.000000e+00> : vector<16x32xf32>
    %48 = tpu.matmul %46, %47, %cst_22 {dimension_numbers = #tpu.dot_dimension_numbers<[1], [0], [0], [1], [0, 0, 1, 1], [], []>} : vector<16x64xbf16>, vector<64x32xbf16>, vector<16x32xf32> -> vector<16x32xf32>
    %c0_23 = arith.constant 0 : index
    %c0_24 = arith.constant 0 : index
    %49 = vector.load %arg5[%c0_23, %c0_24] : memref<1x32xf32, #tpu.memory_space<vmem>>, vector<1x32xf32>
    %50 = vector.broadcast %49 : vector<1x32xf32> to vector<16x32xf32>
    %51 = arith.addf %48, %50 : vector<16x32xf32>
    %52 = arith.truncf %51 : vector<16x32xf32> to vector<16x32xbf16>
    %c0_25 = arith.constant 0 : index
    %c0_26 = arith.constant 0 : index
    %53 = vector.load %arg6[%c0_25, %c0_26] : memref<16x32xbf16, #tpu.memory_space<vmem>>, vector<16x32xbf16>
    tpu.vector_store %arg6[%c0_25, %c0_26], %52 {strides = array<i32>} : memref<16x32xbf16, #tpu.memory_space<vmem>>, vector<16x32xbf16>,
    return
  }
  func.func @transform_0(%arg0: i32) -> (i32, i32) {
    %c0_i32 = arith.constant 0 : i32
    %c0_i32_0 = arith.constant 0 : i32
    return %arg0, %c0_i32 : i32, i32
  }
  func.func @transform_1(%arg0: i32) -> (i32, i32) {
    %c0_i32 = arith.constant 0 : i32
    %c0_i32_0 = arith.constant 0 : i32
    %c0_i32_1 = arith.constant 0 : i32
    return %c0_i32, %c0_i32_0 : i32, i32
  }
  func.func @transform_2(%arg0: i32) -> (i32, i32) {
    %c0_i32 = arith.constant 0 : i32
    %c0_i32_0 = arith.constant 0 : i32
    %c0_i32_1 = arith.constant 0 : i32
    return %c0_i32, %c0_i32_0 : i32, i32
  }
  func.func @transform_3(%arg0: i32) -> (i32, i32) {
    %c0_i32 = arith.constant 0 : i32
    %c0_i32_0 = arith.constant 0 : i32
    %c0_i32_1 = arith.constant 0 : i32
    return %c0_i32, %c0_i32_0 : i32, i32
  }
  func.func @transform_4(%arg0: i32) -> (i32, i32) {
    %c0_i32 = arith.constant 0 : i32
    %c0_i32_0 = arith.constant 0 : i32
    %c0_i32_1 = arith.constant 0 : i32
    return %c0_i32, %c0_i32_0 : i32, i32
  }
  func.func @transform_5(%arg0: i32) -> (i32, i32) {
    %c0_i32 = arith.constant 0 : i32
    %c0_i32_0 = arith.constant 0 : i32
    return %arg0, %c0_i32 : i32, i32
  }
}

</mosaic_0001>

<bundles_post_ra>
// kernel: tpu_custom_call.1
= control target key start
LH: loop header
LB: loop body
LE: loop exit
PB: predicated region body
PF: predicated region fallthrough
CT: control target
= control target key end

     0   :  { %v349_v1 = vmov 0.0   ;;  %vm350_vm0 = vmmov 0   ;;  %vm52_vm1 = vcmask 261120   ;;  %s424_s0 = inlined_call_operand.vmem [shape: bf16[16,32], index: 0, kind: input, shape index: {}]   ;;  %s425_s1 = inlined_call_operand.vmem [shape: bf16[32,64], index: 1, kind: input, shape index: {}]   ;;  %s426_s2 = inlined_call_operand.vmem [shape: f32[1,64], index: 2, kind: input, shape index: {}]   ;;  %s427_s3 = inlined_call_operand.vmem [shape: bf16[64,32], index: 3, kind: input, shape index: {}]   ;;  %s428_s4 = inlined_call_operand.vmem [shape: f32[1,32], index: 4, kind: input, shape index: {}]   ;;  %s429_s5 = inlined_call_operand.hbm [shape: bf16[16,32], index: 5, kind: output, shape index: {}]  }
   0x1   :  { %v310_v0 = vld [vmem:[%s425_s1] sm:$0xff]   ;;  %284 = vmatprep.subr.bf16.mxu0 %v349_v1  ;;  %292 = vmatprep.subr.bf16.mxu1 %v349_v1  ;;  %v311_v2 = vld [vmem:[%s425_s1 + $0x8] sm:$0xff]  }
   0x2   :  { %285 = vmatpush3.bf16.msra.mxu0 %v310_v0  ;;  %288 = vmatprep.mubr.msk.bf16.mxu0 %vm350_vm0, %v349_v1  ;;  %v312_v3 = vld [vmem:[%s424_s0] sm:$0xff]  }
   0x3   :  { %286 = vmatprep.subr.bf16.mxu0 %v349_v1  ;;  %300 = vmatprep.mubr.msk.bf16.mxu1 %vm350_vm0, %v349_v1 }
   0x6   :  { %287 = vmatpush3.bf16.msra.mxu0 %v311_v2 }
   0x7   :  { %10 = vsyncpa [#allocation3], 0  ;;  %v313_v4 = vld [vmem:[%s427_s3] sm:$0xff]   ;;  %v314_v5 = vld [vmem:[%s427_s3 + $0x8] sm:$0xff]   ;;  %v351_v53 = vmov 1.0   ;;  %vm189_vm4 = vcmask 523264  }
   0x8   :  { %293 = vmatpush3.bf16.msra.mxu1 %v313_v4  ;;  %v315_v6 = vld [vmem:[%s427_s3 + $0x10] sm:$0xff]   ;;  %v316_v7 = vld [vmem:[%s427_s3 + $0x18] sm:$0xff]   ;;  %v261_v8 = vld [vmem:[%s426_s2] ss:$0 sm:$0xff]  ;;  %s352_s7 = smov [#allocation2]   ;;  %vm242_vm5 = vcmask 257024  }
   0x9   :  { %289 = vmatmul.mubr.msk.bf16.vlgmr.msra.gmra.mrb[0].mxu0 %vm52_vm1, %v312_v3  ;;  %294 = vmatprep.subr.bf16.mxu1 %v349_v1  ;;  %v266_v3 = vld [vmem:[%s428_s4] ss:$0 sm:$0xff]  ;;  %s250_s8 = sshll.u32 %s352_s7, 4  ;;  %s251_s8 = int_to_ptr.vmem [resolvable:$true] %s250_s8 }
   0xa   :  { %s325_s9 = scalar_lea.vmem %s251_s8, 128  ;;  %p330_p1 = scmp.lt.s32.totalorder %s251_s8, %s251_s8 }
   0xb   :  { %p326_p0 = scmp.ne.s32.totalorder %s251_s8, %s325_s9  ;;  %p331_p2 = scmp.lt.s32.totalorder %s325_s9, %s325_s9 }
   0xc   :  { %295 = vmatpush3.bf16.msra.mxu1 %v314_v5 }
   0xd   :  { %296 = vmatprep.subr.bf16.mxu1 %v349_v1  ;;  %p332_p3 = por %p331_p2, %p330_p1 }
   0xf   :  { %p333_p4 = pnand %p332_p3, %p326_p0 }
  0x10   :  { %297 = vmatpush3.bf16.msra.mxu1 %v315_v6 }
  0x11   :  { %298 = vmatprep.subr.bf16.mxu1 %v349_v1 }
  0x14   :  { %299 = vmatpush3.bf16.msra.mxu1 %v316_v7 }
  0xdc   :  { %v90_v9 = vpop.f32.mrb[0].mxu0 }
  0xdd   :  { %v91_v10 = vadd.f32 %v261_v8, %v90_v9  ;;  %v290_v11 = vpop.f32.mrb[1].mxu0 }
  0xde   :  { %v93_v12 = vpop.f32.mrb[2].mxu0 }
  0xdf   :  { %v99_v13 = vmul.f32 0.70710677, %v91_v10  ;;  %v94_v14 = vadd.f32 %v261_v8, %v93_v12  ;;  %v291_v15 = vpop.f32.mrb[3].mxu0  ;;  %v97_v61 = vmul.f32 0.5, %v91_v10 }
  0xe1   :  { %v105_v16 = vand.u32 2147483647, %v99_v13  ;;  %v100_v17 = vmul.f32 0.70710677, %v94_v14  ;;  %vm101_vm2 = vcmp.lt.f32.partialorder %v99_v13, 0.0  ;;  %v98_v62 = vmul.f32 0.5, %v94_v14 }
  0xe2   :  { %v103_v54 = vsel %vm101_vm2, -1.0, %v351_v53 }
  0xe3   :  { %v107_v18 = vmul.f32 0.3275911, %v105_v16  ;;  %v106_v19 = vand.u32 2147483647, %v100_v17  ;;  %v131_v23 = vsub.f32 0.0, %v105_v16  ;;  %vm102_vm3 = vcmp.lt.f32.partialorder %v100_v17, 0.0 }
  0xe4   :  { %v104_v58 = vsel %vm102_vm3, -1.0, %v351_v53 }
  0xe5   :  { %v109_v20 = vadd.f32 1.0, %v107_v18  ;;  %v108_v21 = vmul.f32 0.3275911, %v106_v19  ;;  %v132_v24 = vsub.f32 0.0, %v106_v19  ;;  %v133_v26 = vmul.f32 %v131_v23, %v105_v16 }
  0xe7   :  { %317 = vrcp.f32 %v109_v20  ;;  %v110_v22 = vadd.f32 1.0, %v108_v21  ;;  %v134_v30 = vmul.f32 %v132_v24, %v106_v19  ;;  %v135_v31 = vmul.f32 1.442695, %v133_v26 }
  0xe9   :  { %319 = vrcp.f32 %v110_v22  ;;  %v137_v36 = vmul.f32 1.442695, %v134_v30 }
  0xea   :  { %321 = vpow2.f32 %v135_v31 }
  0xeb   :  { %323 = vpow2.f32 %v137_v36 }
  0xf1   :  { %v318_v25 = vpop.eup %317 }
  0xf2   :  { %v113_v27 = vmul.f32 1.0614054, %v318_v25 }
  0xf3   :  { %v320_v28 = vpop.eup %319 }
  0xf4   :  { %v115_v29 = vadd.f32 -1.4531521, %v113_v27  ;;  %v114_v32 = vmul.f32 1.0614054, %v320_v28  ;;  %v322_v47 = vpop.eup %321 }
  0xf5   :  { %v324_v51 = vpop.eup %323 }
  0xf6   :  { %v117_v33 = vmul.f32 %v318_v25, %v115_v29  ;;  %v116_v34 = vadd.f32 -1.4531521, %v114_v32 }
  0xf8   :  { %v119_v35 = vadd.f32 1.4214138, %v117_v33  ;;  %v118_v37 = vmul.f32 %v320_v28, %v116_v34 }
  0xfa   :  { %v121_v38 = vmul.f32 %v318_v25, %v119_v35  ;;  %v120_v39 = vadd.f32 1.4214138, %v118_v37 }
  0xfc   :  { %v123_v40 = vadd.f32 -0.28449672, %v121_v38  ;;  %v122_v41 = vmul.f32 %v320_v28, %v120_v39 }
  0xfe   :  { %v125_v42 = vmul.f32 %v318_v25, %v123_v40  ;;  %v124_v43 = vadd.f32 -0.28449672, %v122_v41 }
 0x100   :  { %v127_v44 = vadd.f32 0.2548296, %v125_v42  ;;  %v126_v45 = vmul.f32 %v320_v28, %v124_v43 }
 0x102   :  { %v129_v46 = vmul.f32 %v318_v25, %v127_v44  ;;  %v128_v48 = vadd.f32 0.2548296, %v126_v45 }
 0x104   :  { %v139_v49 = vmul.f32 %v322_v47, %v129_v46  ;;  %v130_v50 = vmul.f32 %v320_v28, %v128_v48 }
 0x106   :  { %v141_v52 = vsub.f32 1.0, %v139_v49  ;;  %v140_v55 = vmul.f32 %v324_v51, %v130_v50 }
 0x108   :  { %v143_v56 = vmul.f32 %v141_v52, %v103_v54  ;;  %v142_v57 = vsub.f32 1.0, %v140_v55 }
 0x10a   :  { %v145_v59 = vadd.f32 1.0, %v143_v56  ;;  %v144_v60 = vmul.f32 %v142_v57, %v104_v58 }
 0x10c   :  { %v146_v63 = vadd.f32 1.0, %v144_v60  ;;  %v147_v0 = vmul.f32 %v145_v59, %v97_v61 }
 0x10e   :  { %v148_v1 = vmul.f32 %v146_v63, %v98_v62 }
 0x110   :  { %v149_v2 = vpack.c.bf16 %v148_v1, %v147_v0 }
 0x112   :  { %301 = vmatmul.mubr.msk.bf16.vlgmr.msra.gmra.mrb[0].mxu1 %vm189_vm4, %v149_v2 }
 0x1e5   :  { %v227_v4 = vpop.f32.mrb[0].mxu1 }
 0x1e6   :  { %v228_v5 = vadd.f32 %v266_v3, %v227_v4  ;;  %v302_v6 = vpop.f32.mrb[1].mxu1 }
 0x1e7   :  { %v230_v7 = vpop.f32.mrb[2].mxu1 }
 0x1e8   :  { %v274_v8 = vpack.c.bf16 %v228_v5, %v228_v5  ;;  %v231_v9 = vadd.f32 %v266_v3, %v230_v7  ;;  %v303_v10 = vpop.f32.mrb[3].mxu1 }
 0x1ea   :  { %243 = vst.msk [vmem:[#allocation2] sm:$0xf] %vm242_vm5, %v274_v8  ;;  %v275_v11 = vpack.c.bf16 %v231_v9, %v231_v9 }
 0x1ec   :  { %244 = vst.msk [vmem:[#allocation2 + $0x4] sm:$0xf] %vm242_vm5, %v275_v11 }
 0x1ed   :  { %336 = shalt.err (!%p333_p4)
}
 0x1ee   :  { %s337_s11 = scalar_lea.hbm %s429_s5, 128 }
 0x1ef   :  { %p338_p5 = scmp.ne.s32.totalorder %s429_s5, %s337_s11  ;;  %p341_p6 = scmp.lt.u32.totalorder %s337_s11, %s429_s5 }
 0x1f1   :  { %p343_p7 = pnand %p341_p6, %p338_p5 }
 0x1f3   :  { %346 = shalt.err (!%p343_p7)
}
 0x1f4   :  { %s353_s16 = smov 64   ;;  %s354_s17 = smov 4  }
 0x1f5   :  { %256 = dma.vmem_to_hbm [thread:$0]  %s251_s8, 128, %s429_s5, [#allocation3], %s353_s16, %s353_s16, %s354_s17  }
 0x1f6   :  { %347 = dma.done.wait [#allocation3], 128  }
 0x1f7   :  { %348 = vsyncadd [#allocation3], 4294967168 }
 0x1f8   :  { %260 = vsyncpa [#allocation3], 1 }

</bundles_post_ra>
